<compile_context>
chip_gen: v7x
topology: tpu7x:2x2x1
jax: 0.10.0
libtpu: 0.0.40
codegen_flags: <defaults>
</compile_context>

<pallas_src>
import jax
import jax.numpy as jnp
from jax import lax
from jax.experimental import pallas as pl
from jax.experimental.pallas import tpu as pltpu


def _round_up(x, m):
    return ((x + m - 1) // m) * m


def _linear_kernel(x_ref, w_ref, b_ref, o_ref, acc_ref):
    # x_ref:   (tm, tk)  activation tile
    # w_ref:   (tn, tk)  weight tile in PyTorch layout (out_features, in_features)
    # b_ref:   (1,  tn)  bias tile
    # o_ref:   (tm, tn)  output tile (same block for every k -> resident)
    # acc_ref: (tm, tn)  f32 accumulator scratch
    k = pl.program_id(2)

    @pl.when(k == 0)
    def _init():
        acc_ref[...] = jnp.zeros_like(acc_ref)

    # Contract the last dim of both operands: (tm,tk) x (tn,tk) -> (tm,tn).
    # This feeds the MXU directly without materializing W^T in HBM.
    acc_ref[...] += lax.dot_general(
        x_ref[...], w_ref[...],
        dimension_numbers=(((1,), (1,)), ((), ())),
        preferred_element_type=jnp.float32,
    )

    @pl.when(k == pl.num_programs(2) - 1)
    def _finalize():
        o_ref[...] = (acc_ref[...] + b_ref[...].astype(jnp.float32)).astype(o_ref.dtype)


def linear_feed_fwd(x, weight, bias, *, tm=256, tn=256, tk=512, compute_dtype=None):
    """Equivalent of nn.Linear(input_dims, output_dims)(x).

    x:      (..., K)
    weight: (N, K)   (PyTorch layout: out_features x in_features)
    bias:   (N,)
    returns (..., N) in x.dtype.

    compute_dtype: optionally cast x/weight (e.g. jnp.bfloat16 on v6e/v7x);
    accumulation is always f32.
    """
    *lead, K = x.shape
    N, Kw = weight.shape
    assert K == Kw, "input_dims mismatch"
    out_dtype = x.dtype

    x2d = x.reshape(-1, K)
    M = x2d.shape[0]

    if compute_dtype is not None:
        x2d = x2d.astype(compute_dtype)
        weight = weight.astype(compute_dtype)

    # ---- lane-dense output: tiny N pads only the (small) weight/bias ----
    N_out = N
    if N < 128:
        N_out = 128
        weight = jnp.pad(weight, ((0, N_out - N), (0, 0)))
        bias = jnp.pad(bias, (0, N_out - N))
    b2d = bias.reshape(1, N_out)

    # ---- tile selection ----
    # Row tile: multiple of 8 (sublane); ragged last block handled by Pallas.
    tm_eff = min(_round_up(tm, 8), _round_up(M, 8))
    # Output-feature tile: multiple of 128 (lane-dense stores).
    tn_eff = min(_round_up(tn, 128), _round_up(N_out, 128))
    # Reduction tile: must exactly cover K (no garbage in the accumulation).
    preferred_tk = max(_round_up(tk, 128), 128)
    tk_eff = None
    for cand in sorted({preferred_tk, 512, 256, 128}, reverse=True):
        if cand <= preferred_tk and K % cand == 0:
            tk_eff = cand
            break
    if tk_eff is None:
        tk_eff = K  # K not a multiple of 128: keep the whole reduction dim.

    grid = (pl.cdiv(M, tm_eff), pl.cdiv(N_out, tn_eff), K // tk_eff)

    # ---- VMEM budget (double-buffered in/out + f32 accumulator) + headroom ----
    in_item = jnp.dtype(x2d.dtype).itemsize
    out_item = jnp.dtype(out_dtype).itemsize
    vmem_bytes = (
        2 * (tm_eff * tk_eff + tn_eff * tk_eff + tn_eff) * in_item
        + 2 * tm_eff * tn_eff * out_item
        + tm_eff * tn_eff * 4
        + (4 << 20)
    )
    vmem_limit = int(min(max(vmem_bytes, 32 << 20), 127 << 20))

    cost = pl.CostEstimate(
        flops=2 * M * K * N_out,
        transcendentals=0,
        bytes_accessed=(x2d.size + weight.size + b2d.size) * in_item
        + M * N_out * out_item,
    )

    out = pl.pallas_call(
        _linear_kernel,
        out_shape=jax.ShapeDtypeStruct((M, N_out), out_dtype),
        grid_spec=pltpu.PrefetchScalarGridSpec(
            num_scalar_prefetch=0,
            grid=grid,
            in_specs=[
                pl.BlockSpec((tm_eff, tk_eff), lambda i, j, k: (i, k)),  # x tile
                pl.BlockSpec((tn_eff, tk_eff), lambda i, j, k: (j, k)),  # W tile (N,K)
                pl.BlockSpec((1, tn_eff), lambda i, j, k: (0, j)),       # bias tile
            ],
            out_specs=pl.BlockSpec((tm_eff, tn_eff), lambda i, j, k: (i, j)),
            scratch_shapes=[pltpu.VMEM((tm_eff, tn_eff), jnp.float32)],
        ),
        compiler_params=pltpu.CompilerParams(
            dimension_semantics=("parallel", "parallel", "arbitrary"),
            vmem_limit_bytes=vmem_limit,
        ),
        cost_estimate=cost,
    )(x2d, weight, b2d)

    if N_out != N:
        out = out[:, :N]
    return out.reshape(*lead, N)


def _reference(x, weight, bias):
    return jnp.einsum("...k,nk->...n", x, weight,
                      precision=jax.lax.Precision.HIGHEST) + bias


if __name__ == "__main__":
    key = jax.random.PRNGKey(0)
    k_x, k_w, k_b, k_x2, k_w2, k_b2 = jax.random.split(key, 6)

    # ---- small shape matching the module example (exercises tiny-N pad path) ----
    input_dims, output_dims = 32, 16
    batch, seq = 2, 8
    bound = 1.0 / (input_dims ** 0.5)
    weight = jax.random.uniform(k_w, (output_dims, input_dims),
                                jnp.float32, -bound, bound)
    bias = jax.random.uniform(k_b, (output_dims,), jnp.float32, -bound, bound)
    x = jax.random.normal(k_x, (batch, seq, input_dims), jnp.float32)

    y = jax.block_until_ready(linear_feed_fwd(x, weight, bias))
    y_ref = _reference(x, weight, bias)
    assert y.shape == (batch, seq, output_dims)
    assert jnp.allclose(y, y_ref, atol=1e-4, rtol=1e-4)

    # ---- moderate shape exercising multi-tile grid + ragged M/N blocks ----
    K2, N2 = 256, 384
    b2, s2 = 4, 96  # M = 384 -> two row tiles of 256 (last one ragged)
    bound2 = 1.0 / (K2 ** 0.5)
    w2 = jax.random.uniform(k_w2, (N2, K2), jnp.float32, -bound2, bound2)
    bvec2 = jax.random.uniform(k_b2, (N2,), jnp.float32, -bound2, bound2)
    x2 = jax.random.normal(k_x2, (b2, s2, K2), jnp.float32)

    y2 = jax.block_until_ready(linear_feed_fwd(x2, w2, bvec2))
    y2_ref = _reference(x2, w2, bvec2)
    assert y2.shape == (b2, s2, N2)
    assert jnp.allclose(y2, y2_ref, atol=2e-4, rtol=2e-4)

    print("KERNEL_OK")
</pallas_src>

<mosaic_0001>
module attributes {stable_mosaic.version = 11 : i64} {
  func.func @_linear_kernel(%arg0: i32, %arg1: i32, %arg2: i32, %arg3: memref<16x32xf32, #tpu.memory_space<vmem>>, %arg4: memref<128x32xf32, #tpu.memory_space<vmem>>, %arg5: memref<1x128xf32, #tpu.memory_space<vmem>>, %arg6: memref<16x128xf32, #tpu.memory_space<vmem>>, %arg7: memref<16x128xf32, #tpu.memory_space<vmem>>) attributes {dimension_semantics = [#tpu.dimension_semantics<parallel>, #tpu.dimension_semantics<parallel>, #tpu.dimension_semantics<arbitrary>], iteration_bounds = array<i64: 1, 1, 1>, scalar_prefetch = 0 : i64, scratch_operands = 1 : i64, tpu.core_type = #tpu.core_type<tc>, window_params = [{transform_indices = @transform_0, window_bounds = array<i64: 16, 32>}, {transform_indices = @transform_1, window_bounds = array<i64: 128, 32>}, {transform_indices = @transform_2, window_bounds = array<i64: 1, 128>}, {transform_indices = @transform_3, window_bounds = array<i64: 16, 128>}]} {
    %c0_i32 = arith.constant 0 : i32
    %0 = arith.cmpi eq, %arg2, %c0_i32 : i32
    %1 = arith.extui %0 : i1 to i32
    %c0_i32_0 = arith.constant 0 : i32
    %2 = arith.cmpi ne, %1, %c0_i32_0 : i32
    scf.if %2 {
      %cst_10 = arith.constant 0.000000e+00 : f32
      %12 = vector.broadcast %cst_10 : f32 to vector<16x128xf32>
      %c0_11 = arith.constant 0 : index
      %c0_12 = arith.constant 0 : index
      %13 = vector.load %arg7[%c0_11, %c0_12] : memref<16x128xf32, #tpu.memory_space<vmem>>, vector<16x128xf32>
      tpu.vector_store %arg7[%c0_11, %c0_12], %12 {strides = array<i32>} : memref<16x128xf32, #tpu.memory_space<vmem>>, vector<16x128xf32>,
    } else {
    }
    %c0 = arith.constant 0 : index
    %c0_1 = arith.constant 0 : index
    %3 = vector.load %arg7[%c0, %c0_1] : memref<16x128xf32, #tpu.memory_space<vmem>>, vector<16x128xf32>
    %c0_2 = arith.constant 0 : index
    %c0_3 = arith.constant 0 : index
    %4 = vector.load %arg3[%c0_2, %c0_3] : memref<16x32xf32, #tpu.memory_space<vmem>>, vector<16x32xf32>
    %c0_4 = arith.constant 0 : index
    %c0_5 = arith.constant 0 : index
    %5 = vector.load %arg4[%c0_4, %c0_5] : memref<128x32xf32, #tpu.memory_space<vmem>>, vector<128x32xf32>
    %cst = arith.constant dense<0.000000e+00> : vector<16x128xf32>
    %6 = tpu.matmul %4, %5, %cst {dimension_numbers = #tpu.dot_dimension_numbers<[1], [1], [0], [0], [0, 0, 1, 0], [], []>} : vector<16x32xf32>, vector<128x32xf32>, vector<16x128xf32> -> vector<16x128xf32>
    %7 = arith.addf %3, %6 : vector<16x128xf32>
    %c0_6 = arith.constant 0 : index
    %c0_7 = arith.constant 0 : index
    %8 = vector.load %arg7[%c0_6, %c0_7] : memref<16x128xf32, #tpu.memory_space<vmem>>, vector<16x128xf32>
    tpu.vector_store %arg7[%c0_6, %c0_7], %7 {strides = array<i32>} : memref<16x128xf32, #tpu.memory_space<vmem>>, vector<16x128xf32>,
    %c0_i32_8 = arith.constant 0 : i32
    %9 = arith.cmpi eq, %arg2, %c0_i32_8 : i32
    %10 = arith.extui %9 : i1 to i32
    %c0_i32_9 = arith.constant 0 : i32
    %11 = arith.cmpi ne, %10, %c0_i32_9 : i32
    scf.if %11 {
      %c0_10 = arith.constant 0 : index
      %c0_11 = arith.constant 0 : index
      %12 = vector.load %arg7[%c0_10, %c0_11] : memref<16x128xf32, #tpu.memory_space<vmem>>, vector<16x128xf32>
      %c0_12 = arith.constant 0 : index
      %c0_13 = arith.constant 0 : index
      %13 = vector.load %arg5[%c0_12, %c0_13] : memref<1x128xf32, #tpu.memory_space<vmem>>, vector<1x128xf32>
      %14 = vector.broadcast %13 : vector<1x128xf32> to vector<16x128xf32>
      %15 = arith.addf %12, %14 : vector<16x128xf32>
      %c0_14 = arith.constant 0 : index
      %c0_15 = arith.constant 0 : index
      %16 = vector.load %arg6[%c0_14, %c0_15] : memref<16x128xf32, #tpu.memory_space<vmem>>, vector<16x128xf32>
      tpu.vector_store %arg6[%c0_14, %c0_15], %15 {strides = array<i32>} : memref<16x128xf32, #tpu.memory_space<vmem>>, vector<16x128xf32>,
    } else {
    }
    return
  }
  func.func @transform_0(%arg0: i32, %arg1: i32, %arg2: i32) -> (i32, i32) {
    %c0_i32 = arith.constant 0 : i32
    return %arg0, %arg2 : i32, i32
  }
  func.func @transform_1(%arg0: i32, %arg1: i32, %arg2: i32) -> (i32, i32) {
    %c0_i32 = arith.constant 0 : i32
    return %arg1, %arg2 : i32, i32
  }
  func.func @transform_2(%arg0: i32, %arg1: i32, %arg2: i32) -> (i32, i32) {
    %c0_i32 = arith.constant 0 : i32
    %c0_i32_0 = arith.constant 0 : i32
    return %c0_i32, %arg1 : i32, i32
  }
  func.func @transform_3(%arg0: i32, %arg1: i32, %arg2: i32) -> (i32, i32) {
    %c0_i32 = arith.constant 0 : i32
    return %arg0, %arg1 : i32, i32
  }
}

</mosaic_0001>

<bundles_post_ra>
// kernel: tpu_custom_call.1
= control target key start
LH: loop header
LB: loop body
LE: loop exit
PB: predicated region body
PF: predicated region fallthrough
CT: control target
= control target key end

     0   :  { %vm41_vm0 = vcmask 261120   ;;  %s486_s0 = inlined_call_operand.vmem [shape: f32[16,32], index: 0, kind: input, shape index: {}]   ;;  %s487_s1 = inlined_call_operand.vmem [shape: f32[128,32], index: 1, kind: input, shape index: {}]   ;;  %s488_s2 = inlined_call_operand.vmem [shape: f32[1,128], index: 2, kind: input, shape index: {}]   ;;  %s489_s3 = inlined_call_operand.hbm [shape: f32[16,128], index: 3, kind: output, shape index: {}]  }
   0x1   :  { %v25_v0 = vld [vmem:[%s487_s1] sm:$0xff]  ;;  %v26_v1 = vld [vmem:[%s487_s1 + $0x8] sm:$0xff]  ;;  %v27_v2 = vld [vmem:[%s487_s1 + $0x10] sm:$0xff] }
   0x2   :  { %v279_v3 = vpack.c.bf16 %v26_v1, %v25_v0  ;;  %vm388_vm1 = vmpackc.low %vm41_vm0, %vm41_vm0  ;;  %v28_v5 = vld [vmem:[%s487_s1 + $0x18] sm:$0xff]  ;;  %v23_v7 = vld [vmem:[%s486_s0] sm:$0xff] }
   0x3   :  { %v285_v6 = vpack.c.bf16 %v28_v5, %v27_v2  ;;  %v29_v8 = vld [vmem:[%s487_s1 + $0x20] sm:$0xff]  ;;  %v30_v9 = vld [vmem:[%s487_s1 + $0x28] sm:$0xff]  ;;  %276 = vmatprep.mubr.msk.f32.mxu0 %vm41_vm0, %v23_v7 }
   0x4   :  { %281 = vmatprep.subr.msk.bf16.mxu0 %vm388_vm1, %v279_v3 }
   0x5   :  { %284 = vmatpush3.bf16.xpose.msk.msra.mxu0 %vm388_vm1, %v279_v3 }
   0x6   :  { %287 = vmatprep.subr.msk.bf16.mxu0 %vm388_vm1, %v285_v6 }
   0x7   :  { %8 = vsyncpa [#allocation4], 0  ;;  %v291_v10 = vpack.c.bf16 %v30_v9, %v29_v8  ;;  %v31_v11 = vld [vmem:[%s487_s1 + $0x30] sm:$0xff]  ;;  %v32_v12 = vld [vmem:[%s487_s1 + $0x38] sm:$0xff] }
   0x8   :  { %v297_v13 = vpack.c.bf16 %v32_v12, %v31_v11  ;;  %v33_v14 = vld [vmem:[%s487_s1 + $0x40] sm:$0xff]  ;;  %v34_v15 = vld [vmem:[%s487_s1 + $0x48] sm:$0xff]  ;;  %v35_v17 = vld [vmem:[%s487_s1 + $0x50] sm:$0xff] }
   0x9   :  { %v303_v16 = vpack.c.bf16 %v34_v15, %v33_v14  ;;  %v36_v18 = vld [vmem:[%s487_s1 + $0x58] sm:$0xff]  ;;  %v37_v20 = vld [vmem:[%s487_s1 + $0x60] sm:$0xff]  ;;  %v38_v21 = vld [vmem:[%s487_s1 + $0x68] sm:$0xff] }
   0xa   :  { %v309_v19 = vpack.c.bf16 %v36_v18, %v35_v17  ;;  %v315_v22 = vpack.c.bf16 %v38_v21, %v37_v20  ;;  %v39_v23 = vld [vmem:[%s487_s1 + $0x70] sm:$0xff]  ;;  %v40_v24 = vld [vmem:[%s487_s1 + $0x78] sm:$0xff]  ;;  %v24_v26 = vld [vmem:[%s486_s0 + $0x8] sm:$0xff]  ;;  %s354_s1 = smov [#allocation3]  }
   0xb   :  { %v321_v25 = vpack.c.bf16 %v40_v24, %v39_v23  ;;  %v225_v27 = vld [vmem:[%s488_s2] ss:$0 sm:$0xff]  ;;  %s196_s23 = sshll.u32 %s354_s1, 4  ;;  %s197_s23 = int_to_ptr.vmem [resolvable:$true] %s196_s23 }
   0xc   :  { %s330_s24 = scalar_lea.vmem %s197_s23, 256  ;;  %p335_p1 = scmp.lt.s32.totalorder %s197_s23, %s197_s23 }
   0xd   :  { %290 = vmatpush3.bf16.xpose.msk.msra.mxu0 %vm388_vm1, %v285_v6  ;;  %p331_p0 = scmp.ne.s32.totalorder %s197_s23, %s330_s24  ;;  %p336_p2 = scmp.lt.s32.totalorder %s330_s24, %s330_s24 }
   0xe   :  { %293 = vmatprep.subr.msk.bf16.mxu0 %vm388_vm1, %v291_v10 }
   0xf   :  { %p337_p3 = por %p336_p2, %p335_p1 }
  0x11   :  { %p338_p4 = pnand %p337_p3, %p331_p0 }
  0x15   :  { %296 = vmatpush3.bf16.xpose.msk.msra.mxu0 %vm388_vm1, %v291_v10 }
  0x16   :  { %299 = vmatprep.subr.msk.bf16.mxu0 %vm388_vm1, %v297_v13 }
  0x1d   :  { %302 = vmatpush3.bf16.xpose.msk.msra.mxu0 %vm388_vm1, %v297_v13 }
  0x1e   :  { %305 = vmatprep.subr.msk.bf16.mxu0 %vm388_vm1, %v303_v16 }
  0x25   :  { %308 = vmatpush3.bf16.xpose.msk.msra.mxu0 %vm388_vm1, %v303_v16 }
  0x26   :  { %311 = vmatprep.subr.msk.bf16.mxu0 %vm388_vm1, %v309_v19 }
  0x2d   :  { %314 = vmatpush3.bf16.xpose.msk.msra.mxu0 %vm388_vm1, %v309_v19 }
  0x2e   :  { %317 = vmatprep.subr.msk.bf16.mxu0 %vm388_vm1, %v315_v22 }
  0x35   :  { %320 = vmatpush3.bf16.xpose.msk.msra.mxu0 %vm388_vm1, %v315_v22 }
  0x36   :  { %323 = vmatprep.subr.msk.bf16.mxu0 %vm388_vm1, %v321_v25 }
  0x3d   :  { %326 = vmatpush3.bf16.xpose.msk.msra.mxu0 %vm388_vm1, %v321_v25 }
  0x44   :  { %277 = vmatmul.mubr.msk.f32.vlgmr.msra.gmra.mrb[0].mxu0 %vm41_vm0, %v24_v26 }
 0x117   :  { %v278_v28 = vpop.f32.mrb[0].mxu0 }
 0x118   :  { %v188_v29 = vadd.f32 %v278_v28, %v225_v27  ;;  %v162_v30 = vpop.f32.mrb[1].mxu0 }
 0x119   :  { %v187_v31 = vadd.f32 %v225_v27, %v162_v30 }
 0x11a   :  { %190 = vst [vmem:[#allocation3 + $0x8] sm:$0xff] %v188_v29 }
 0x11b   :  { %189 = vst [vmem:[#allocation3] sm:$0xff] %v187_v31 }
 0x11c   :  { %341 = shalt.err (!%p338_p4)
}
 0x11d   :  { %s342_s2 = scalar_lea.hbm %s489_s3, 256 }
 0x11e   :  { %p343_p5 = scmp.ne.s32.totalorder %s489_s3, %s342_s2  ;;  %p346_p6 = scmp.lt.u32.totalorder %s342_s2, %s489_s3 }
 0x120   :  { %p348_p7 = pnand %p346_p6, %p343_p5 }
 0x122   :  { %351 = shalt.err (!%p348_p7)
}
 0x123   :  { %s355_s30 = smov 128   ;;  %s356_s4 = smov 8  }
 0x124   :  { %202 = dma.vmem_to_hbm [thread:$0]  %s197_s23, 256, %s489_s3, [#allocation4], %s355_s30, %s355_s30, %s356_s4  }
 0x125   :  { %352 = dma.done.wait [#allocation4], 256  }
 0x126   :  { %353 = vsyncadd [#allocation4], 4294967040 }
 0x127   :  { %206 = vsyncpa [#allocation4], 1 }

</bundles_post_ra>
